<compile_context>
chip_gen: v7x
topology: tpu7x:2x2x1
jax: 0.10.0
libtpu: 0.0.40
codegen_flags: <defaults>
</compile_context>

<pallas_src>
import jax
import jax.numpy as jnp
import numpy as np
from jax.experimental import pallas as pl
from jax.experimental.pallas import tpu as pltpu


def _ceil_to(n: int, m: int) -> int:
    return ((n + m - 1) // m) * m


def mlp_kernel(x_ref, w1_ref, b1_ref, w2_ref, b2_ref, o_ref):
    # linear1: [TB, IN_P](bf16) @ [IN_P, HID_P](bf16) -> f32 accumulator on MXU
    h = jnp.dot(x_ref[...], w1_ref[...], preferred_element_type=jnp.float32)
    # bias + LeakyReLU (PyTorch default negative_slope = 0.01) in f32 on the acc
    h = h + b1_ref[...]                      # b1 is [1, HID_P] f32, broadcasts over TB
    h = jnp.where(h >= 0, h, 0.01 * h)
    # linear2: downcast LHS to bf16 once, accumulate in f32
    y = jnp.dot(h.astype(jnp.bfloat16), w2_ref[...],
                preferred_element_type=jnp.float32)
    y = y + b2_ref[...]                      # b2 is [1, OUT_P] f32
    o_ref[...] = y.astype(o_ref.dtype)


def mlp_forward(x, w1, b1, w2, b2, *, tb=256):
    """x: [B, n_in] f32; w1: [n_in, n_hidden]; b1: [n_hidden];
       w2: [n_hidden, n_out]; b2: [n_out]  ->  [B, n_out] f32."""
    B, n_in = x.shape
    n_hidden = w1.shape[1]
    n_out = w2.shape[1]

    # Lane-dense padded sizes (multiples of 128 on the lane axis).
    IN_P = _ceil_to(n_in, 128)
    HID_P = _ceil_to(n_hidden, 128)
    OUT_P = _ceil_to(n_out, 128)
    TB = tb
    B_P = _ceil_to(B, TB)

    # Zero-pad once in the wrapper; cast matmul operands to bf16 (f32 accumulation
    # happens inside the kernel via preferred_element_type).
    x_p = jnp.zeros((B_P, IN_P), jnp.bfloat16).at[:B, :n_in].set(
        x.astype(jnp.bfloat16))
    w1_p = jnp.zeros((IN_P, HID_P), jnp.bfloat16).at[:n_in, :n_hidden].set(
        w1.astype(jnp.bfloat16))
    b1_p = jnp.zeros((1, HID_P), jnp.float32).at[0, :n_hidden].set(
        b1.astype(jnp.float32).reshape(-1))
    w2_p = jnp.zeros((HID_P, OUT_P), jnp.bfloat16).at[:n_hidden, :n_out].set(
        w2.astype(jnp.bfloat16))
    b2_p = jnp.zeros((1, OUT_P), jnp.float32).at[0, :n_out].set(
        b2.astype(jnp.float32).reshape(-1))

    grid = (B_P // TB,)
    out = pl.pallas_call(
        mlp_kernel,
        out_shape=jax.ShapeDtypeStruct((B_P, OUT_P), jnp.float32),
        grid_spec=pl.GridSpec(
            grid=grid,
            in_specs=[
                pl.BlockSpec((TB, IN_P), lambda i: (i, 0)),      # x: batch-tiled
                pl.BlockSpec((IN_P, HID_P), lambda i: (0, 0)),   # w1: resident
                pl.BlockSpec((1, HID_P), lambda i: (0, 0)),      # b1: resident
                pl.BlockSpec((HID_P, OUT_P), lambda i: (0, 0)),  # w2: resident
                pl.BlockSpec((1, OUT_P), lambda i: (0, 0)),      # b2: resident
            ],
            out_specs=pl.BlockSpec((TB, OUT_P), lambda i: (i, 0)),
        ),
        compiler_params=pltpu.CompilerParams(
            dimension_semantics=("parallel",)),
    )(x_p, w1_p, b1_p, w2_p, b2_p)

    # Strip batch / lane padding.
    return out[:B, :n_out]


if __name__ == "__main__":
    # Module sizes: n_input=32, n_hidden=64, n_output=16; batch large enough to
    # exercise the batch-tiled grid (2 tiles of 256 rows).
    B, n_input, n_hidden, n_output = 512, 32, 64, 16

    key = jax.random.PRNGKey(0)
    kx, kw1, kb1, kw2, kb2 = jax.random.split(key, 5)

    x = jax.random.normal(kx, (B, n_input), dtype=jnp.float32)

    # Deterministic init mimicking nn.Linear's uniform(-1/sqrt(fan_in), 1/sqrt(fan_in)).
    bound1 = 1.0 / np.sqrt(np.float32(n_input))
    w1 = jax.random.uniform(kw1, (n_input, n_hidden), jnp.float32, -bound1, bound1)
    b1 = jax.random.uniform(kb1, (n_hidden,), jnp.float32, -bound1, bound1)

    bound2 = 1.0 / np.sqrt(np.float32(n_hidden))
    w2 = jax.random.uniform(kw2, (n_hidden, n_output), jnp.float32, -bound2, bound2)
    b2 = jax.random.uniform(kb2, (n_output,), jnp.float32, -bound2, bound2)

    y = mlp_forward(x, w1, b1, w2, b2)
    jax.block_until_ready(y)

    # Reference (numpy f32) computed from the same bf16-rounded operands the
    # kernel sees, so the comparison isolates accumulation-order differences.
    def _bf16(a):
        return np.asarray(jnp.asarray(a).astype(jnp.bfloat16).astype(jnp.float32))

    x_r, w1_r, w2_r = _bf16(x), _bf16(w1), _bf16(w2)
    b1_r, b2_r = np.asarray(b1), np.asarray(b2)
    h_ref = x_r @ w1_r + b1_r
    h_ref = np.where(h_ref >= 0, h_ref, 0.01 * h_ref).astype(np.float32)
    h_ref = _bf16(h_ref)
    y_ref = h_ref @ w2_r + b2_r

    assert np.allclose(np.asarray(y), y_ref, atol=5e-3, rtol=5e-3), \
        "mismatch vs reference"

    print("KERNEL_OK")
</pallas_src>

<mosaic_0001>
module attributes {stable_mosaic.version = 11 : i64} {
  func.func @mlp_kernel(%arg0: i32, %arg1: memref<256x128xbf16, #tpu.memory_space<vmem>>, %arg2: memref<128x128xbf16, #tpu.memory_space<vmem>>, %arg3: memref<1x128xf32, #tpu.memory_space<vmem>>, %arg4: memref<128x128xbf16, #tpu.memory_space<vmem>>, %arg5: memref<1x128xf32, #tpu.memory_space<vmem>>, %arg6: memref<256x128xf32, #tpu.memory_space<vmem>>) attributes {dimension_semantics = [#tpu.dimension_semantics<parallel>], iteration_bounds = array<i64: 2>, scalar_prefetch = 0 : i64, scratch_operands = 0 : i64, tpu.core_type = #tpu.core_type<tc>, window_params = [{transform_indices = @transform_0, window_bounds = array<i64: 256, 128>}, {pipeline_mode = #tpu.pipeline_mode<synchronous>, transform_indices = @transform_1, window_bounds = array<i64: 128, 128>}, {pipeline_mode = #tpu.pipeline_mode<synchronous>, transform_indices = @transform_2, window_bounds = array<i64: 1, 128>}, {pipeline_mode = #tpu.pipeline_mode<synchronous>, transform_indices = @transform_3, window_bounds = array<i64: 128, 128>}, {pipeline_mode = #tpu.pipeline_mode<synchronous>, transform_indices = @transform_4, window_bounds = array<i64: 1, 128>}, {transform_indices = @transform_5, window_bounds = array<i64: 256, 128>}]} {
    %c0 = arith.constant 0 : index
    %c0_0 = arith.constant 0 : index
    %0 = vector.load %arg1[%c0, %c0_0] : memref<256x128xbf16, #tpu.memory_space<vmem>>, vector<256x128xbf16>
    %c0_1 = arith.constant 0 : index
    %c0_2 = arith.constant 0 : index
    %1 = vector.load %arg2[%c0_1, %c0_2] : memref<128x128xbf16, #tpu.memory_space<vmem>>, vector<128x128xbf16>
    %cst = arith.constant dense<0.000000e+00> : vector<256x128xf32>
    %2 = tpu.matmul %0, %1, %cst {dimension_numbers = #tpu.dot_dimension_numbers<[1], [0], [0], [1], [0, 0, 1, 1], [], []>} : vector<256x128xbf16>, vector<128x128xbf16>, vector<256x128xf32> -> vector<256x128xf32>
    %c0_3 = arith.constant 0 : index
    %c0_4 = arith.constant 0 : index
    %3 = vector.load %arg3[%c0_3, %c0_4] : memref<1x128xf32, #tpu.memory_space<vmem>>, vector<1x128xf32>
    %4 = vector.broadcast %3 : vector<1x128xf32> to vector<256x128xf32>
    %5 = arith.addf %2, %4 : vector<256x128xf32>
    %cst_5 = arith.constant 0.000000e+00 : f32
    %6 = vector.broadcast %cst_5 : f32 to vector<256x128xf32>
    %7 = arith.cmpf oge, %5, %6 : vector<256x128xf32>
    %cst_6 = arith.constant 0.00999999977 : f32
    %8 = vector.broadcast %cst_6 : f32 to vector<256x128xf32>
    %9 = arith.mulf %8, %5 : vector<256x128xf32>
    %10 = arith.select %7, %5, %9 : vector<256x128xi1>, vector<256x128xf32>
    %11 = arith.truncf %10 : vector<256x128xf32> to vector<256x128xbf16>
    %c0_7 = arith.constant 0 : index
    %c0_8 = arith.constant 0 : index
    %12 = vector.load %arg4[%c0_7, %c0_8] : memref<128x128xbf16, #tpu.memory_space<vmem>>, vector<128x128xbf16>
    %cst_9 = arith.constant dense<0.000000e+00> : vector<256x128xf32>
    %13 = tpu.matmul %11, %12, %cst_9 {dimension_numbers = #tpu.dot_dimension_numbers<[1], [0], [0], [1], [0, 0, 1, 1], [], []>} : vector<256x128xbf16>, vector<128x128xbf16>, vector<256x128xf32> -> vector<256x128xf32>
    %c0_10 = arith.constant 0 : index
    %c0_11 = arith.constant 0 : index
    %14 = vector.load %arg5[%c0_10, %c0_11] : memref<1x128xf32, #tpu.memory_space<vmem>>, vector<1x128xf32>
    %15 = vector.broadcast %14 : vector<1x128xf32> to vector<256x128xf32>
    %16 = arith.addf %13, %15 : vector<256x128xf32>
    %c0_12 = arith.constant 0 : index
    %c0_13 = arith.constant 0 : index
    %17 = vector.load %arg6[%c0_12, %c0_13] : memref<256x128xf32, #tpu.memory_space<vmem>>, vector<256x128xf32>
    tpu.vector_store %arg6[%c0_12, %c0_13], %16 {strides = array<i32>} : memref<256x128xf32, #tpu.memory_space<vmem>>, vector<256x128xf32>,
    return
  }
  func.func @transform_0(%arg0: i32) -> (i32, i32) {
    %c0_i32 = arith.constant 0 : i32
    %c0_i32_0 = arith.constant 0 : i32
    return %arg0, %c0_i32 : i32, i32
  }
  func.func @transform_1(%arg0: i32) -> (i32, i32) {
    %c0_i32 = arith.constant 0 : i32
    %c0_i32_0 = arith.constant 0 : i32
    %c0_i32_1 = arith.constant 0 : i32
    return %c0_i32, %c0_i32_0 : i32, i32
  }
  func.func @transform_2(%arg0: i32) -> (i32, i32) {
    %c0_i32 = arith.constant 0 : i32
    %c0_i32_0 = arith.constant 0 : i32
    %c0_i32_1 = arith.constant 0 : i32
    return %c0_i32, %c0_i32_0 : i32, i32
  }
  func.func @transform_3(%arg0: i32) -> (i32, i32) {
    %c0_i32 = arith.constant 0 : i32
    %c0_i32_0 = arith.constant 0 : i32
    %c0_i32_1 = arith.constant 0 : i32
    return %c0_i32, %c0_i32_0 : i32, i32
  }
  func.func @transform_4(%arg0: i32) -> (i32, i32) {
    %c0_i32 = arith.constant 0 : i32
    %c0_i32_0 = arith.constant 0 : i32
    %c0_i32_1 = arith.constant 0 : i32
    return %c0_i32, %c0_i32_0 : i32, i32
  }
  func.func @transform_5(%arg0: i32) -> (i32, i32) {
    %c0_i32 = arith.constant 0 : i32
    %c0_i32_0 = arith.constant 0 : i32
    return %arg0, %c0_i32 : i32, i32
  }
}

</mosaic_0001>

<bundles_post_ra>
// kernel: tpu_custom_call.1
= control target key start
LH: loop header
LB: loop body
LE: loop exit
PB: predicated region body
PF: predicated region fallthrough
CT: control target
= control target key end

     0   :  { %10 = vsyncpa [#allocation3], 0  ;;  %s1985_s0 = inlined_call_operand.hbm [shape: bf16[512,128], index: 0, kind: input, shape index: {}]   ;;  %s1986_s1 = inlined_call_operand.hbm [shape: bf16[128,128], index: 1, kind: input, shape index: {}]   ;;  %s1987_s2 = inlined_call_operand.vmem [shape: f32[1,128], index: 2, kind: input, shape index: {}]   ;;  %s1988_s3 = inlined_call_operand.hbm [shape: bf16[128,128], index: 3, kind: input, shape index: {}]   ;;  %s1989_s4 = inlined_call_operand.vmem [shape: f32[1,128], index: 4, kind: input, shape index: {}]   ;;  %s1990_s5 = inlined_call_operand.hbm [shape: f32[512,128], index: 5, kind: output, shape index: {}]  }
   0x1   :  { %12 = vsyncpa [#allocation3 + $0x1], 0 }
   0x2   :  { %13 = vsyncpa [#allocation6], 0 }
   0x3   :  { %14 = vsyncpa [#allocation4], 0 }
   0x4   :  { %16 = vsyncpa [#allocation4 + $0x1], 0  ;;  %s1614_s18 = smov 0   ;;  %s1616_s19 = smov 0  }
   0x5   :  { %s1618_s20 = smov 0   ;;  %s1620_s21 = smov 0  }
   0x6 LB: > { %s1635_s22 = sadd.s32 4294967295, %s1574_s21   ;;  %s1117_s23 = sadd.s32 4294967294, %s1574_s21   ;;  %s1574_s21 = sphi %s1620_s21, %s2010_s21   ;;  %s1570_s20 = sphi %s1618_s20, %s2009_s20   ;;  %s1566_s19 = sphi %s1616_s19, %s2008_s19   ;;  %s1562_s18 = sphi %s1614_s18, %s2007_s18  }
   0x7   : > { %p42_p0 = scmp.ne.s32.totalorder %s1566_s19, %s1562_s18  ;;  %p1991_p1 = scmp.eq.s32.totalorder %s1635_s22, 0 }
   0x8   : > { %p156_p3 = scmp.eq.s32.totalorder %s1117_s23, 1  ;;  %p1118_p5 = scmp.ge.s32.totalorder %s1574_s21, 1 }
   0x9   : > { %p1644_p4 = por %p1991_p1, %p42_p0  ;;  %p163_p7 = scmp.lt.s32.totalorder %s1574_s21, 3 }
   0xa   : > { %p1649_p6 = por %p156_p3, %p42_p0  ;;  %s1576_s27 = smov [#allocation5]  }
   0xb   : > { %s1994_s24 = scalar_select %p1644_p4, 1, 0 }
   0xc   : > { %s1995_s25 = scalar_select %p1649_p6, 1, 0 }
   0xd   : > { %p1654_p8 = pnand %p1118_p5, %p163_p7  ;;  %s175_s28 = sshll.u32 %s1576_s27, 4  ;;  %s1658_s28 = int_to_ptr.vmem [resolvable:$true] %s175_s28 }
   0xe   : > { %s1577_s30 = smov [#allocation7]   ;;  %s1418_s9 = scalar_lea.hbm %s1986_s1, 1024 }
   0xf   : > { %p1327_p9 = pneg %p1654_p8  ;;  %s191_s6 = sshll.u32 %s1577_s30, 4  ;;  %s1669_s6 = int_to_ptr.vmem [resolvable:$true] %s191_s6 }
  0x10   : > { %p1419_p12 = scmp.ne.s32.totalorder %s1986_s1, %s1418_s9  ;;  %p1425_p5 = scmp.lt.u32.totalorder %s1418_s9, %s1986_s1 }
  0x11   : > { %p1665_p11 = pnand %p1327_p9, %p1991_p1 }
  0x13   : > { %p1420_p13 = pneg %p1665_p11 }
  0x15   : > { %p1421_p0 = pnand %p1420_p13, %p1419_p12 }
  0x17   : > { %p1422_p3 = pneg %p1421_p0 }
  0x19   : > { %p1427_p7 = pnand %p1425_p5, %p1422_p3 }
  0x1b   : > { %1430 = shalt.err (!%p1427_p7)
}
  0x1c   : > { %s1431_s14 = scalar_lea.vmem %s1658_s28, 1024  ;;  %p1439_p2 = scmp.lt.s32.totalorder %s1658_s28, %s1658_s28 }
  0x1d   : > { %p1432_p9 = scmp.ne.s32.totalorder %s1658_s28, %s1431_s14  ;;  %p1440_p12 = scmp.lt.s32.totalorder %s1431_s14, %s1431_s14 }
  0x1f   : > { %p1434_p10 = pnand %p1432_p9, %p1420_p13  ;;  %p1441_p0 = por %p1440_p12, %p1439_p2 }
  0x21   : > { %p1435_p1 = pneg %p1434_p10 }
  0x23   : > { %p1442_p6 = pnand %p1441_p0, %p1435_p1 }
  0x25   : > { %1445 = shalt.err (!%p1442_p6)
}
  0x26   : > { %s1578_s15 = smov 64   ;;  %s1579_s16 = smov 4  }
  0x27   : > { %1330 = dma.hbm_to_vmem [thread:$0]  (!%p1665_p11), %s1986_s1, 1024, %s1658_s28, [#allocation6], %s1578_s15, %s1578_s15, %s1579_s16  }
  0x28   : > { %s1446_s7 = scalar_lea.hbm %s1988_s3, 1024 }
  0x29   : > { %p1447_p1 = scmp.ne.s32.totalorder %s1988_s3, %s1446_s7  ;;  %p1453_p10 = scmp.lt.u32.totalorder %s1446_s7, %s1988_s3 }
  0x2b   : > { %p1449_p2 = pnand %p1447_p1, %p1420_p13 }
  0x2d   : > { %p1450_p6 = pneg %p1449_p2 }
  0x2f   : > { %p1455_p3 = pnand %p1453_p10, %p1450_p6 }
  0x31   : > { %1458 = shalt.err (!%p1455_p3)
}
  0x32   : > { %s1459_s28 = scalar_lea.vmem %s1669_s6, 1024  ;;  %p1467_p12 = scmp.lt.s32.totalorder %s1669_s6, %s1669_s6 }
  0x33   : > { %p1460_p5 = scmp.ne.s32.totalorder %s1669_s6, %s1459_s28  ;;  %p1468_p0 = scmp.lt.s32.totalorder %s1459_s28, %s1459_s28 }
  0x35   : > { %p1462_p7 = pnand %p1460_p5, %p1420_p13  ;;  %p1469_p1 = por %p1468_p0, %p1467_p12 }
  0x37   : > { %p1463_p9 = pneg %p1462_p7 }
  0x39   : > { %p1470_p2 = pnand %p1469_p1, %p1463_p9 }
  0x3b   : > { %1473 = shalt.err (!%p1470_p2)
}
  0x3c   : > { %1333 = dma.hbm_to_vmem [thread:$0]  (!%p1665_p11), %s1988_s3, 1024, %s1669_s6, [#allocation6], %s1578_s15, %s1578_s15, %s1579_s16  }
  0x3d   : > { %s1730_s29 = sadd.s32 1, %s1574_s21   ;;  %s29_s14 = sadd.s32 1, %s1570_s20 }
  0x3e   : > { %s26_s17 = ssub.s32 %s1574_s21, %s1730_s29  ;;  %p36_p13 = scmp.ne.s32.totalorder %s1570_s20, %s1566_s19 }
  0x3f   : > { %p27_p6 = scmp.eq.s32.totalorder %s26_s17, 0  ;;  %p37_p10 = scmp.eq.s32.totalorder %s1574_s21, 0 }
  0x40   : > { %p1998_p3 = scmp.eq.s32.totalorder %s1635_s22, 1  ;;  %p1344_p7 = scmp.lt.s32.totalorder %s1574_s21, 2 }
  0x41   : > { %s1746_s27 = scalar_select %p27_p6, %s1570_s20, %s29_s14  }
  0x42   : > { %p1740_p5 = por %p1998_p3, %p36_p13  ;;  %p38_p9 = por %p37_p10, %p36_p13 }
  0x43   : > { %s208_s30 = sand.u32 1, %s1570_s20   ;;  %s1169_s6 = sshll.u32 %s1574_s21, 11 }
  0x44   : > { %s1999_s23 = scalar_select %p1740_p5, 1, 0 }
  0x45   : > { %s1122_s7 = sshll.u32 %s208_s30, 7  ;;  %s1753_s10 = scalar_lea.hbm %s1985_s0, %s1169_s6 }
  0x46   : > { %s212_s11 = scalar_lea.vmem [#allocation2], %s1122_s7  ;;  %p1757_p11 = pnand %p1344_p7, %p38_p9 }
  0x47   : > { %s219_s28 = sshll.u32 %s212_s11, 4  ;;  %s1761_s13 = scalar_lea.sflag [#allocation3], %s208_s30  ;;  %s1755_s28 = int_to_ptr.vmem [resolvable:$true] %s219_s28 }
  0x48   : > { %s1474_s14 = scalar_lea.hbm %s1753_s10, 2048  ;;  %p1476_p0 = pneg %p1757_p11 }
  0x49   : > { %p1475_p12 = scmp.ne.s32.totalorder %s1753_s10, %s1474_s14  ;;  %s1479_s6 = scalar_lea.hbm %s1985_s0, 4096 }
  0x4a   : > { %p1480_p13 = scmp.lt.u32.totalorder %s1753_s10, %s1985_s0  ;;  %p1481_p6 = scmp.lt.u32.totalorder %s1479_s6, %s1474_s14 }
  0x4b   : > { %p1477_p1 = pnand %p1476_p0, %p1475_p12  ;;  %p1483_p3 = scmp.lt.u32.totalorder %s1474_s14, %s1753_s10 }
  0x4c   : > { %p1482_p10 = por %p1481_p6, %p1480_p13 }
  0x4d   : > { %p1478_p2 = pneg %p1477_p1 }
  0x4e   : > { %p1484_p7 = por %p1483_p3, %p1482_p10 }
  0x50   : > { %p1485_p9 = pnand %p1484_p7, %p1478_p2 }
  0x52   : > { %1488 = shalt.err (!%p1485_p9)
}
  0x53   : > { %s1489_s30 = scalar_lea.vmem %s1755_s28, 2048  ;;  %s1580_s11 = smov [#allocation2]  }
  0x54   : > { %p1490_p12 = scmp.ne.s32.totalorder %s1755_s28, %s1489_s30  ;;  %s1494_s17 = sshll.u32 %s1580_s11, 4  ;;  %s1495_s17 = int_to_ptr.vmem [resolvable:$false] %s1494_s17 }
  0x55   : > { %s1496_s7 = scalar_lea.vmem %s1495_s17, 4096  ;;  %p1497_p4 = scmp.lt.s32.totalorder %s1755_s28, %s1495_s17 }
  0x56   : > { %p1492_p1 = pnand %p1490_p12, %p1476_p0  ;;  %p1498_p13 = scmp.lt.s32.totalorder %s1496_s7, %s1489_s30 }
  0x58   : > { %p1493_p5 = pneg %p1492_p1  ;;  %p1499_p6 = por %p1498_p13, %p1497_p4 }
  0x5a   : > { %p1500_p10 = pnand %p1499_p6, %p1493_p5 }
  0x5c   : > { %1503 = shalt.err (!%p1500_p10)
}
  0x5d   : > { %1337 = dma.hbm_to_vmem [thread:$0]  (!%p1757_p11), %s1753_s10, 2048, %s1755_s28, %s1761_s13, %s1578_s15, %s1578_s15, %s1579_s16  }
  0x5e   : > { %231 = sbr.rel (%p1654_p8) target bundleno = 649 (0x289), region = 40  ;;  %s1795_s14 = sand.u32 (!%p1654_p8), 1, %s1566_s19  }
  0x5f   : > { %s1126_s6 = sshll.u32 (!%p1654_p8), %s1795_s14, 7  ;;  %s234_s8 = scalar_lea.sflag (!%p1654_p8), [#allocation3], %s1795_s14 }
  0x60   : > { %s1799_s9 = scalar_lea.vmem (!%p1654_p8), [#allocation2], %s1126_s6  ;;  %p2001_p4 = scmp.ne.s32.totalorder (!%p1654_p8), %s1994_s24, 0 }
  0x65   : > { %1549 = dma.done.wait (%p2001_p4), %s234_s8, 2048  }
  0x66   : > { %1551 = vsyncadd (%p2001_p4), %s234_s8, 4294965248  ;;  %p2002_p5 = scmp.eq.s32.totalorder %s1635_s22, 0 }
  0x68   : > { %1553 = dma.done.wait (%p2002_p5), [#allocation6], 2048   ;;  %p2003_p8 = pmov %p2002_p5 }
  0x69   : > { %v1386_v0 = vld [vmem:[#allocation5] sm:$0xff]   ;;  %v1387_v1 = vld [vmem:[#allocation5 + $0x8] sm:$0xff]   ;;  %v1388_v2 = vld [vmem:[#allocation5 + $0x10] sm:$0xff]   ;;  %s1129_s15 = sshll.u32 %s1795_s14, 8  ;;  %s1170_s12 = sshll.u32 %s1635_s22, 12 }
  0x6a   : > { %1555 = vsyncadd (%p2003_p8), [#allocation6], 4294965248  ;;  %1219 = vmatprep.subr.bf16.mxu0 %v1386_v0  ;;  %v1389_v3 = vld [vmem:[#allocation5 + $0x18] sm:$0xff]   ;;  %v1394_v4 = vld [vmem:[%s1799_s9] sm:$0xff]   ;;  %s1870_s28 = scalar_lea.vmem [#allocation8], %s1129_s15  ;;  %s1935_s17 = scalar_lea.hbm %s1990_s5, %s1170_s12 }
  0x6b   : > { %1220 = vmatpush3.bf16.msra.mxu0 %v1386_v0  ;;  %1235 = vmatprep.mubr.bf16.mxu0 %v1394_v4  ;;  %v1390_v5 = vld [vmem:[#allocation5 + $0x20] sm:$0xff]   ;;  %v1391_v6 = vld [vmem:[#allocation5 + $0x28] sm:$0xff]   ;;  %v1392_v7 = vld [vmem:[#allocation5 + $0x30] sm:$0xff]   ;;  %s1025_s13 = sshll.u32 %s1870_s28, 4  ;;  %s1012_s22 = scalar_lea.sflag [#allocation4], %s1795_s14  ;;  %s1937_s13 = int_to_ptr.vmem [resolvable:$true] %s1025_s13 }
  0x6c   : > { %1221 = vmatprep.subr.bf16.mxu0 %v1387_v1  ;;  %v1393_v8 = vld [vmem:[#allocation5 + $0x38] sm:$0xff]   ;;  %v1410_v9 = vld [vmem:[#allocation7] sm:$0xff]   ;;  %v1411_v10 = vld [vmem:[#allocation7 + $0x8] sm:$0xff]   ;;  %s1504_s7 = scalar_lea.vmem %s1937_s13, 4096  ;;  %p2004_p0 = scmp.ne.s32.totalorder %s1999_s23, 0 }
  0x6d   : > { %1267 = vmatprep.subr.bf16.mxu1 %v1410_v9  ;;  %v1395_v11 = vld [vmem:[%s1799_s9 + $0x8] sm:$0xff]   ;;  %v1412_v12 = vld [vmem:[#allocation7 + $0x10] sm:$0xff]   ;;  %v1413_v14 = vld [vmem:[#allocation7 + $0x18] sm:$0xff]   ;;  %p1505_p11 = scmp.ne.s32.totalorder %s1937_s13, %s1504_s7  ;;  %s1581_s6 = smov [#allocation8]  }
  0x6e   : > { %1268 = vmatpush3.bf16.msra.mxu1 %v1410_v9  ;;  %v1396_v13 = vld [vmem:[%s1799_s9 + $0x10] sm:$0xff]   ;;  %v1414_v15 = vld [vmem:[#allocation7 + $0x20] sm:$0xff]   ;;  %v1397_v16 = vld [vmem:[%s1799_s9 + $0x18] sm:$0xff]   ;;  %s1508_s8 = sshll.u32 %s1581_s6, 4  ;;  %s1509_s8 = int_to_ptr.vmem [resolvable:$false] %s1508_s8 }
  0x6f   : > { %1222 = vmatpush3.bf16.msra.mxu0 %v1387_v1  ;;  %1269 = vmatprep.subr.bf16.mxu1 %v1411_v10  ;;  %v1398_v17 = vld [vmem:[%s1799_s9 + $0x20] sm:$0xff]   ;;  %v1399_v18 = vld [vmem:[%s1799_s9 + $0x28] sm:$0xff]   ;;  %v1400_v19 = vld [vmem:[%s1799_s9 + $0x30] sm:$0xff]   ;;  %p1506_p2 = pnand %p1505_p11, %p2004_p0  ;;  %p1511_p7 = scmp.lt.s32.totalorder %s1937_s13, %s1509_s8 }
  0x70   : > { %1223 = vmatprep.subr.bf16.mxu0 %v1388_v2  ;;  %v1401_v20 = vld [vmem:[%s1799_s9 + $0x38] sm:$0xff]   ;;  %v1402_v21 = vld [vmem:[%s1799_s9 + $0x40] sm:$0xff]   ;;  %v1403_v22 = vld [vmem:[%s1799_s9 + $0x48] sm:$0xff]  }
  0x71   : > { %v1404_v23 = vld [vmem:[%s1799_s9 + $0x50] sm:$0xff]   ;;  %v1405_v24 = vld [vmem:[%s1799_s9 + $0x58] sm:$0xff]   ;;  %v1406_v25 = vld [vmem:[%s1799_s9 + $0x60] sm:$0xff]   ;;  %p1507_p3 = pneg %p1506_p2 }
  0x72   : > { %1270 = vmatpush3.bf16.msra.mxu1 %v1411_v10  ;;  %v1407_v26 = vld [vmem:[%s1799_s9 + $0x68] sm:$0xff]   ;;  %v1408_v27 = vld [vmem:[%s1799_s9 + $0x70] sm:$0xff]   ;;  %v1409_v28 = vld [vmem:[%s1799_s9 + $0x78] sm:$0xff]   ;;  %s1510_s9 = scalar_lea.vmem %s1509_s8, 8192 }
  0x73   : > { %1224 = vmatpush3.bf16.msra.mxu0 %v1388_v2  ;;  %1271 = vmatprep.subr.bf16.mxu1 %v1412_v12  ;;  %v1415_v29 = vld [vmem:[#allocation7 + $0x28] sm:$0xff]   ;;  %v1416_v30 = vld [vmem:[#allocation7 + $0x30] sm:$0xff]   ;;  %v1417_v31 = vld [vmem:[#allocation7 + $0x38] sm:$0xff]   ;;  %p1512_p9 = scmp.lt.s32.totalorder %s1510_s9, %s1504_s7 }
  0x74   : > { %1225 = vmatprep.subr.bf16.mxu0 %v1389_v3  ;;  %v1828_v32 = vld [vmem:[%s1987_s2] ss:$0 sm:$0xff] }
  0x75   : > { %p1513_p12 = por %p1512_p9, %p1511_p7 }
  0x76   : > { %1272 = vmatpush3.bf16.msra.mxu1 %v1412_v12 }
  0x77   : > { %1226 = vmatpush3.bf16.msra.mxu0 %v1389_v3  ;;  %1273 = vmatprep.subr.bf16.mxu1 %v1413_v14  ;;  %p1514_p1 = pnand %p1513_p12, %p1507_p3 }
  0x78   : > { %1227 = vmatprep.subr.bf16.mxu0 %v1390_v5 }
  0x7a   : > { %1274 = vmatpush3.bf16.msra.mxu1 %v1413_v14 }
  0x7b   : > { %1228 = vmatpush3.bf16.msra.mxu0 %v1390_v5  ;;  %1275 = vmatprep.subr.bf16.mxu1 %v1414_v15 }
  0x7c   : > { %1229 = vmatprep.subr.bf16.mxu0 %v1391_v6 }
  0x7e   : > { %1276 = vmatpush3.bf16.msra.mxu1 %v1414_v15 }
  0x7f   : > { %1230 = vmatpush3.bf16.msra.mxu0 %v1391_v6  ;;  %1277 = vmatprep.subr.bf16.mxu1 %v1415_v29 }
  0x80   : > { %1231 = vmatprep.subr.bf16.mxu0 %v1392_v7 }
  0x82   : > { %1278 = vmatpush3.bf16.msra.mxu1 %v1415_v29 }
  0x83   : > { %1232 = vmatpush3.bf16.msra.mxu0 %v1392_v7  ;;  %1279 = vmatprep.subr.bf16.mxu1 %v1416_v30 }
  0x84   : > { %1233 = vmatprep.subr.bf16.mxu0 %v1393_v8 }
  0x86   : > { %1280 = vmatpush3.bf16.msra.mxu1 %v1416_v30 }
  0x87   : > { %1234 = vmatpush3.bf16.msra.mxu0 %v1393_v8  ;;  %1281 = vmatprep.subr.bf16.mxu1 %v1417_v31 }
  0x8a   : > { %1236 = vmatmul.mubr.bf16.vlgmr.msra.gmra.mrb[0].mxu0 %v1395_v11  ;;  %1282 = vmatpush3.bf16.msra.mxu1 %v1417_v31 }
  0x8b   : > { %1239 = vmatprep.mubr.bf16.mxu0 %v1396_v13 }
  0x92   : > { %1240 = vmatmul.mubr.bf16.gmra.mrb[4].mxu0 %v1397_v16 }
  0x93   : > { %1243 = vmatprep.mubr.bf16.mxu0 %v1398_v17 }
  0x9a   : > { %1244 = vmatmul.mubr.bf16.gmra.mrb[8].mxu0 %v1399_v18 }
  0x9b   : > { %1247 = vmatprep.mubr.bf16.mxu0 %v1400_v19 }
  0xa2   : > { %1248 = vmatmul.mubr.bf16.gmra.mrb[12].mxu0 %v1401_v20 }
  0xa3   : > { %1251 = vmatprep.mubr.bf16.mxu0 %v1402_v21 }
  0xaa   : > { %1252 = vmatmul.mubr.bf16.gmra.mrb[16].mxu0 %v1403_v22 }
  0xab   : > { %1255 = vmatprep.mubr.bf16.mxu0 %v1404_v23 }
  0xb2   : > { %1256 = vmatmul.mubr.bf16.gmra.mrb[20].mxu0 %v1405_v24 }
  0xb3   : > { %1259 = vmatprep.mubr.bf16.mxu0 %v1406_v25 }
  0xba   : > { %1260 = vmatmul.mubr.bf16.gmra.mrb[24].mxu0 %v1407_v26 }
  0xbb   : > { %1263 = vmatprep.mubr.bf16.mxu0 %v1408_v27 }
  0xc2   : > { %1264 = vmatmul.mubr.bf16.gmra.mrb[28].mxu0 %v1409_v28 }
 0x15d   : > { %v1237_v33 = vpop.f32.mrb[0].mxu0 }
 0x15e   : > { %v517_v34 = vadd.f32 %v1237_v33, %v1828_v32  ;;  %v508_v35 = vpop.f32.mrb[1].mxu0 }
 0x15f   : > { %v509_v36 = vadd.f32 %v1828_v32, %v508_v35  ;;  %v1238_v37 = vpop.f32.mrb[2].mxu0 }
 0x160   : > { %v669_v38 = vmul.f32 0.01, %v517_v34  ;;  %v520_v39 = vadd.f32 %v1238_v37, %v1828_v32  ;;  %v511_v40 = vpop.f32.mrb[3].mxu0  ;;  %vm637_vm0 = vcmp.ge.f32.partialorder %v517_v34, 0.0 }
 0x161   : > { %v667_v41 = vmul.f32 0.01, %v509_v36  ;;  %v512_v42 = vadd.f32 %v1828_v32, %v511_v40  ;;  %vm635_vm2 = vcmp.ge.f32.partialorder %v509_v36, 0.0 }
 0x162   : > { %vm638_vm1 = vcmp.ge.f32.partialorder %v520_v39, 0.0  ;;  %v670_v43 = vmul.f32 0.01, %v520_v39  ;;  %v701_v45 = vsel %vm637_vm0, %v517_v34, %v669_v38 }
 0x163   : > { %v668_v44 = vmul.f32 0.01, %v512_v42  ;;  %vm636_vm3 = vcmp.ge.f32.partialorder %v512_v42, 0.0  ;;  %v699_v48 = vsel %vm635_vm2, %v509_v36, %v667_v41 }
 0x164   : > { %v702_v46 = vsel %vm638_vm1, %v520_v39, %v670_v43 }
 0x165   : > { %v1241_v47 = vpop.f32.mrb[4].mxu0  ;;  %v700_v49 = vsel %vm636_vm3, %v512_v42, %v668_v44  ;;  %v732_v50 = vpack.c.bf16 %v702_v46, %v701_v45 }
 0x166   : > { %v533_v51 = vadd.f32 %v1241_v47, %v1828_v32  ;;  %v524_v52 = vpop.f32.mrb[5].mxu0  ;;  %v731_v53 = vpack.c.bf16 %v700_v49, %v699_v48 }
 0x167   : > { %v525_v54 = vadd.f32 %v1828_v32, %v524_v52  ;;  %v1242_v55 = vpop.f32.mrb[6].mxu0 }
 0x168   : > { %v673_v56 = vmul.f32 0.01, %v533_v51  ;;  %v536_v57 = vadd.f32 %v1242_v55, %v1828_v32  ;;  %v527_v58 = vpop.f32.mrb[7].mxu0  ;;  %1283 = vmatprep.mubr.bf16.mxu1 %v731_v53  ;;  %vm641_vm4 = vcmp.ge.f32.partialorder %v533_v51, 0.0 }
 0x169   : > { %v671_v59 = vmul.f32 0.01, %v525_v54  ;;  %v528_v60 = vadd.f32 %v1828_v32, %v527_v58  ;;  %1284 = vmatmul.mubr.bf16.vlgmr.msra.gmra.mrb[0].mxu1 %v732_v50  ;;  %vm639_vm5 = vcmp.ge.f32.partialorder %v525_v54, 0.0 }
 0x16a   : > { %vm642_vm6 = vcmp.ge.f32.partialorder %v536_v57, 0.0  ;;  %v674_v61 = vmul.f32 0.01, %v536_v57  ;;  %v705_v63 = vsel %vm641_vm4, %v533_v51, %v673_v56 }
 0x16b   : > { %vm640_vm7 = vcmp.ge.f32.partialorder %v528_v60, 0.0  ;;  %v672_v62 = vmul.f32 0.01, %v528_v60  ;;  %v703_v2 = vsel %vm639_vm5, %v525_v54, %v671_v59 }
 0x16c   : > { %v706_v0 = vsel %vm642_vm6, %v536_v57, %v674_v61 }
 0x16d   : > { %v1245_v1 = vpop.f32.mrb[8].mxu0  ;;  %v704_v3 = vsel %vm640_vm7, %v528_v60, %v672_v62  ;;  %v734_v4 = vpack.c.bf16 %v706_v0, %v705_v63 }
 0x16e   : > { %v549_v5 = vadd.f32 %v1245_v1, %v1828_v32  ;;  %v540_v6 = vpop.f32.mrb[9].mxu0  ;;  %v733_v7 = vpack.c.bf16 %v704_v3, %v703_v2 }
 0x16f   : > { %v541_v8 = vadd.f32 %v1828_v32, %v540_v6  ;;  %v1246_v9 = vpop.f32.mrb[10].mxu0 }
 0x170   : > { %v677_v10 = vmul.f32 0.01, %v549_v5  ;;  %v552_v11 = vadd.f32 %v1246_v9, %v1828_v32  ;;  %v543_v12 = vpop.f32.mrb[11].mxu0  ;;  %1287 = vmatprep.mubr.bf16.mxu1 %v733_v7  ;;  %vm645_vm8 = vcmp.ge.f32.partialorder %v549_v5, 0.0 }
 0x171   : > { %v675_v13 = vmul.f32 0.01, %v541_v8  ;;  %v544_v14 = vadd.f32 %v1828_v32, %v543_v12  ;;  %1288 = vmatmul.mubr.bf16.gmra.mrb[4].mxu1 %v734_v4  ;;  %vm643_vm9 = vcmp.ge.f32.partialorder %v541_v8, 0.0 }
 0x172   : > { %vm646_vm10 = vcmp.ge.f32.partialorder %v552_v11, 0.0  ;;  %v678_v15 = vmul.f32 0.01, %v552_v11  ;;  %v709_v17 = vsel %vm645_vm8, %v549_v5, %v677_v10 }
 0x173   : > { %vm644_vm11 = vcmp.ge.f32.partialorder %v544_v14, 0.0  ;;  %v676_v16 = vmul.f32 0.01, %v544_v14  ;;  %v707_v20 = vsel %vm643_vm9, %v541_v8, %v675_v13 }
 0x174   : > { %v710_v18 = vsel %vm646_vm10, %v552_v11, %v678_v15 }
 0x175   : > { %v1249_v19 = vpop.f32.mrb[12].mxu0  ;;  %v708_v21 = vsel %vm644_vm11, %v544_v14, %v676_v16  ;;  %v736_v22 = vpack.c.bf16 %v710_v18, %v709_v17 }
 0x176   : > { %v565_v23 = vadd.f32 %v1249_v19, %v1828_v32  ;;  %v556_v24 = vpop.f32.mrb[13].mxu0  ;;  %v735_v25 = vpack.c.bf16 %v708_v21, %v707_v20 }
 0x177   : > { %v557_v26 = vadd.f32 %v1828_v32, %v556_v24  ;;  %v1250_v27 = vpop.f32.mrb[14].mxu0 }
 0x178   : > { %v681_v28 = vmul.f32 0.01, %v565_v23  ;;  %v568_v29 = vadd.f32 %v1250_v27, %v1828_v32  ;;  %v559_v30 = vpop.f32.mrb[15].mxu0  ;;  %1291 = vmatprep.mubr.bf16.mxu1 %v735_v25  ;;  %vm649_vm12 = vcmp.ge.f32.partialorder %v565_v23, 0.0 }
 0x179   : > { %v679_v31 = vmul.f32 0.01, %v557_v26  ;;  %v560_v33 = vadd.f32 %v1828_v32, %v559_v30  ;;  %1292 = vmatmul.mubr.bf16.gmra.mrb[8].mxu1 %v736_v22  ;;  %vm647_vm13 = vcmp.ge.f32.partialorder %v557_v26, 0.0 }
 0x17a   : > { %vm650_vm14 = vcmp.ge.f32.partialorder %v568_v29, 0.0  ;;  %v682_v34 = vmul.f32 0.01, %v568_v29  ;;  %v713_v36 = vsel %vm649_vm12, %v565_v23, %v681_v28 }
 0x17b   : > { %vm648_vm15 = vcmp.ge.f32.partialorder %v560_v33, 0.0  ;;  %v680_v35 = vmul.f32 0.01, %v560_v33  ;;  %v711_v39 = vsel %vm647_vm13, %v557_v26, %v679_v31 }
 0x17c   : > { %v714_v37 = vsel %vm650_vm14, %v568_v29, %v682_v34 }
 0x17d   : > { %v1253_v38 = vpop.f32.mrb[16].mxu0  ;;  %v712_v40 = vsel %vm648_vm15, %v560_v33, %v680_v35  ;;  %v738_v41 = vpack.c.bf16 %v714_v37, %v713_v36 }
 0x17e   : > { %v581_v42 = vadd.f32 %v1253_v38, %v1828_v32  ;;  %v572_v43 = vpop.f32.mrb[17].mxu0  ;;  %v737_v44 = vpack.c.bf16 %v712_v40, %v711_v39 }
 0x17f   : > { %v573_v45 = vadd.f32 %v1828_v32, %v572_v43  ;;  %v1254_v46 = vpop.f32.mrb[18].mxu0 }
 0x180   : > { %v685_v47 = vmul.f32 0.01, %v581_v42  ;;  %v584_v48 = vadd.f32 %v1254_v46, %v1828_v32  ;;  %v575_v49 = vpop.f32.mrb[19].mxu0  ;;  %1295 = vmatprep.mubr.bf16.mxu1 %v737_v44  ;;  %vm653_vm0 = vcmp.ge.f32.partialorder %v581_v42, 0.0 }
 0x181   : > { %v683_v50 = vmul.f32 0.01, %v573_v45  ;;  %v576_v51 = vadd.f32 %v1828_v32, %v575_v49  ;;  %1296 = vmatmul.mubr.bf16.gmra.mrb[12].mxu1 %v738_v41  ;;  %vm651_vm1 = vcmp.ge.f32.partialorder %v573_v45, 0.0 }
 0x182   : > { %vm654_vm2 = vcmp.ge.f32.partialorder %v584_v48, 0.0  ;;  %v686_v52 = vmul.f32 0.01, %v584_v48  ;;  %v717_v54 = vsel %vm653_vm0, %v581_v42, %v685_v47 }
 0x183   : > { %vm652_vm3 = vcmp.ge.f32.partialorder %v576_v51, 0.0  ;;  %v684_v53 = vmul.f32 0.01, %v576_v51  ;;  %v715_v57 = vsel %vm651_vm1, %v573_v45, %v683_v50 }
 0x184   : > { %v718_v55 = vsel %vm654_vm2, %v584_v48, %v686_v52 }
 0x185   : > { %v1257_v56 = vpop.f32.mrb[20].mxu0  ;;  %v716_v58 = vsel %vm652_vm3, %v576_v51, %v684_v53  ;;  %v740_v59 = vpack.c.bf16 %v718_v55, %v717_v54  ;;  %v1866_v51 = vld [vmem:[%s1989_s4] ss:$0 sm:$0xff] }
 0x186   : > { %v597_v60 = vadd.f32 %v1257_v56, %v1828_v32  ;;  %v588_v61 = vpop.f32.mrb[21].mxu0  ;;  %v739_v62 = vpack.c.bf16 %v716_v58, %v715_v57 }
 0x187   : > { %v589_v63 = vadd.f32 %v1828_v32, %v588_v61  ;;  %v1258_v0 = vpop.f32.mrb[22].mxu0 }
 0x188   : > { %v689_v1 = vmul.f32 0.01, %v597_v60  ;;  %v600_v2 = vadd.f32 %v1258_v0, %v1828_v32  ;;  %v591_v3 = vpop.f32.mrb[23].mxu0  ;;  %1299 = vmatprep.mubr.bf16.mxu1 %v739_v62  ;;  %vm657_vm4 = vcmp.ge.f32.partialorder %v597_v60, 0.0 }
 0x189   : > { %v687_v4 = vmul.f32 0.01, %v589_v63  ;;  %v592_v5 = vadd.f32 %v1828_v32, %v591_v3  ;;  %1300 = vmatmul.mubr.bf16.gmra.mrb[16].mxu1 %v740_v59  ;;  %vm655_vm5 = vcmp.ge.f32.partialorder %v589_v63, 0.0 }
 0x18a   : > { %vm658_vm6 = vcmp.ge.f32.partialorder %v600_v2, 0.0  ;;  %v690_v6 = vmul.f32 0.01, %v600_v2  ;;  %v721_v8 = vsel %vm657_vm4, %v597_v60, %v689_v1 }
 0x18b   : > { %vm656_vm7 = vcmp.ge.f32.partialorder %v592_v5, 0.0  ;;  %v688_v7 = vmul.f32 0.01, %v592_v5  ;;  %v719_v11 = vsel %vm655_vm5, %v589_v63, %v687_v4 }
 0x18c   : > { %v722_v9 = vsel %vm658_vm6, %v600_v2, %v690_v6 }
 0x18d   : > { %v1261_v10 = vpop.f32.mrb[24].mxu0  ;;  %v720_v12 = vsel %vm656_vm7, %v592_v5, %v688_v7  ;;  %v742_v13 = vpack.c.bf16 %v722_v9, %v721_v8 }
 0x18e   : > { %v613_v14 = vadd.f32 %v1261_v10, %v1828_v32  ;;  %v604_v15 = vpop.f32.mrb[25].mxu0  ;;  %v741_v16 = vpack.c.bf16 %v720_v12, %v719_v11 }
 0x18f   : > { %v605_v17 = vadd.f32 %v1828_v32, %v604_v15  ;;  %v1262_v18 = vpop.f32.mrb[26].mxu0 }
 0x190   : > { %v693_v19 = vmul.f32 0.01, %v613_v14  ;;  %v616_v20 = vadd.f32 %v1262_v18, %v1828_v32  ;;  %v607_v21 = vpop.f32.mrb[27].mxu0  ;;  %1303 = vmatprep.mubr.bf16.mxu1 %v741_v16  ;;  %vm661_vm8 = vcmp.ge.f32.partialorder %v613_v14, 0.0 }
 0x191   : > { %v691_v22 = vmul.f32 0.01, %v605_v17  ;;  %v608_v23 = vadd.f32 %v1828_v32, %v607_v21  ;;  %1304 = vmatmul.mubr.bf16.gmra.mrb[20].mxu1 %v742_v13  ;;  %vm659_vm9 = vcmp.ge.f32.partialorder %v605_v17, 0.0 }
 0x192   : > { %vm662_vm10 = vcmp.ge.f32.partialorder %v616_v20, 0.0  ;;  %v694_v24 = vmul.f32 0.01, %v616_v20  ;;  %v725_v26 = vsel %vm661_vm8, %v613_v14, %v693_v19 }
 0x193   : > { %vm660_vm11 = vcmp.ge.f32.partialorder %v608_v23, 0.0  ;;  %v692_v25 = vmul.f32 0.01, %v608_v23  ;;  %v723_v29 = vsel %vm659_vm9, %v605_v17, %v691_v22 }
 0x194   : > { %v726_v27 = vsel %vm662_vm10, %v616_v20, %v694_v24 }
 0x195   : > { %v1265_v28 = vpop.f32.mrb[28].mxu0  ;;  %v724_v30 = vsel %vm660_vm11, %v608_v23, %v692_v25  ;;  %v744_v31 = vpack.c.bf16 %v726_v27, %v725_v26 }
 0x196   : > { %v629_v33 = vadd.f32 %v1265_v28, %v1828_v32  ;;  %v620_v34 = vpop.f32.mrb[29].mxu0  ;;  %v743_v35 = vpack.c.bf16 %v724_v30, %v723_v29 }
 0x197   : > { %v621_v36 = vadd.f32 %v1828_v32, %v620_v34  ;;  %v1266_v37 = vpop.f32.mrb[30].mxu0 }
 0x198   : > { %v697_v38 = vmul.f32 0.01, %v629_v33  ;;  %v632_v39 = vadd.f32 %v1266_v37, %v1828_v32  ;;  %v623_v40 = vpop.f32.mrb[31].mxu0  ;;  %1307 = vmatprep.mubr.bf16.mxu1 %v743_v35  ;;  %vm665_vm12 = vcmp.ge.f32.partialorder %v629_v33, 0.0 }
 0x199   : > { %v695_v41 = vmul.f32 0.01, %v621_v36  ;;  %v624_v42 = vadd.f32 %v1828_v32, %v623_v40  ;;  %1308 = vmatmul.mubr.bf16.gmra.mrb[24].mxu1 %v744_v31  ;;  %vm663_vm13 = vcmp.ge.f32.partialorder %v621_v36, 0.0 }
 0x19a   : > { %vm666_vm14 = vcmp.ge.f32.partialorder %v632_v39, 0.0  ;;  %v698_v43 = vmul.f32 0.01, %v632_v39  ;;  %v729_v45 = vsel %vm665_vm12, %v629_v33, %v697_v38 }
 0x19b   : > { %vm664_vm15 = vcmp.ge.f32.partialorder %v624_v42, 0.0  ;;  %v696_v44 = vmul.f32 0.01, %v624_v42  ;;  %v727_v47 = vsel %vm663_vm13, %v621_v36, %v695_v41 }
 0x19c   : > { %v730_v46 = vsel %vm666_vm14, %v632_v39, %v698_v43 }
 0x19d   : > { %v728_v48 = vsel %vm664_vm15, %v624_v42, %v696_v44  ;;  %v746_v49 = vpack.c.bf16 %v730_v46, %v729_v45 }
 0x19e   : > { %v745_v50 = vpack.c.bf16 %v728_v48, %v727_v47 }
 0x1a0   : > { %1311 = vmatprep.mubr.bf16.mxu1 %v745_v50 }
 0x1a1   : > { %1312 = vmatmul.mubr.bf16.gmra.mrb[28].mxu1 %v746_v49 }
 0x23c   : > { %v1285_v32 = vpop.f32.mrb[0].mxu1 }
 0x23d   : > { %v861_v52 = vadd.f32 %v1285_v32, %v1866_v51  ;;  %v852_v53 = vpop.f32.mrb[1].mxu1 }
 0x23e   : > { %v853_v54 = vadd.f32 %v1866_v51, %v852_v53  ;;  %v1286_v55 = vpop.f32.mrb[2].mxu1 }
 0x23f   : > { %981 = vst [vmem:[%s1870_s28 + $0x10] sm:$0xff] %v861_v52  ;;  %v864_v56 = vadd.f32 %v1286_v55, %v1866_v51  ;;  %v855_v57 = vpop.f32.mrb[3].mxu1 }
 0x240   : > { %979 = vst [vmem:[%s1870_s28] sm:$0xff] %v853_v54  ;;  %v856_v58 = vadd.f32 %v1866_v51, %v855_v57 }
 0x241   : > { %982 = vst [vmem:[%s1870_s28 + $0x18] sm:$0xff] %v864_v56 }
 0x242   : > { %980 = vst [vmem:[%s1870_s28 + $0x8] sm:$0xff] %v856_v58 }
 0x244   : > { %v1289_v59 = vpop.f32.mrb[4].mxu1 }
 0x245   : > { %v877_v60 = vadd.f32 %v1289_v59, %v1866_v51  ;;  %v868_v61 = vpop.f32.mrb[5].mxu1 }
 0x246   : > { %v869_v62 = vadd.f32 %v1866_v51, %v868_v61  ;;  %v1290_v63 = vpop.f32.mrb[6].mxu1 }
 0x247   : > { %985 = vst [vmem:[%s1870_s28 + $0x30] sm:$0xff] %v877_v60  ;;  %v880_v0 = vadd.f32 %v1290_v63, %v1866_v51  ;;  %v871_v1 = vpop.f32.mrb[7].mxu1 }
 0x248   : > { %983 = vst [vmem:[%s1870_s28 + $0x20] sm:$0xff] %v869_v62  ;;  %v872_v2 = vadd.f32 %v1866_v51, %v871_v1 }
 0x249   : > { %986 = vst [vmem:[%s1870_s28 + $0x38] sm:$0xff] %v880_v0 }
 0x24a   : > { %984 = vst [vmem:[%s1870_s28 + $0x28] sm:$0xff] %v872_v2 }
 0x24c   : > { %v1293_v3 = vpop.f32.mrb[8].mxu1 }
 0x24d   : > { %v893_v4 = vadd.f32 %v1293_v3, %v1866_v51  ;;  %v884_v5 = vpop.f32.mrb[9].mxu1 }
 0x24e   : > { %v885_v6 = vadd.f32 %v1866_v51, %v884_v5  ;;  %v1294_v7 = vpop.f32.mrb[10].mxu1 }
 0x24f   : > { %989 = vst [vmem:[%s1870_s28 + $0x50] sm:$0xff] %v893_v4  ;;  %v896_v8 = vadd.f32 %v1294_v7, %v1866_v51  ;;  %v887_v9 = vpop.f32.mrb[11].mxu1 }
 0x250   : > { %987 = vst [vmem:[%s1870_s28 + $0x40] sm:$0xff] %v885_v6  ;;  %v888_v10 = vadd.f32 %v1866_v51, %v887_v9 }
 0x251   : > { %990 = vst [vmem:[%s1870_s28 + $0x58] sm:$0xff] %v896_v8 }
 0x252   : > { %988 = vst [vmem:[%s1870_s28 + $0x48] sm:$0xff] %v888_v10 }
 0x254   : > { %v1297_v11 = vpop.f32.mrb[12].mxu1 }
 0x255   : > { %v909_v12 = vadd.f32 %v1297_v11, %v1866_v51  ;;  %v900_v13 = vpop.f32.mrb[13].mxu1 }
 0x256   : > { %v901_v14 = vadd.f32 %v1866_v51, %v900_v13  ;;  %v1298_v15 = vpop.f32.mrb[14].mxu1 }
 0x257   : > { %993 = vst [vmem:[%s1870_s28 + $0x70] sm:$0xff] %v909_v12  ;;  %v912_v16 = vadd.f32 %v1298_v15, %v1866_v51  ;;  %v903_v17 = vpop.f32.mrb[15].mxu1 }
 0x258   : > { %991 = vst [vmem:[%s1870_s28 + $0x60] sm:$0xff] %v901_v14  ;;  %v904_v18 = vadd.f32 %v1866_v51, %v903_v17 }
 0x259   : > { %994 = vst [vmem:[%s1870_s28 + $0x78] sm:$0xff] %v912_v16 }
 0x25a   : > { %992 = vst [vmem:[%s1870_s28 + $0x68] sm:$0xff] %v904_v18 }
 0x25c   : > { %v1301_v19 = vpop.f32.mrb[16].mxu1 }
 0x25d   : > { %v925_v20 = vadd.f32 %v1301_v19, %v1866_v51  ;;  %v916_v21 = vpop.f32.mrb[17].mxu1 }
 0x25e   : > { %v917_v22 = vadd.f32 %v1866_v51, %v916_v21  ;;  %v1302_v23 = vpop.f32.mrb[18].mxu1 }
 0x25f   : > { %997 = vst [vmem:[%s1870_s28 + $0x90] sm:$0xff] %v925_v20  ;;  %v928_v24 = vadd.f32 %v1302_v23, %v1866_v51  ;;  %v919_v25 = vpop.f32.mrb[19].mxu1 }
 0x260   : > { %995 = vst [vmem:[%s1870_s28 + $0x80] sm:$0xff] %v917_v22  ;;  %v920_v26 = vadd.f32 %v1866_v51, %v919_v25 }
 0x261   : > { %998 = vst [vmem:[%s1870_s28 + $0x98] sm:$0xff] %v928_v24 }
 0x262   : > { %996 = vst [vmem:[%s1870_s28 + $0x88] sm:$0xff] %v920_v26 }
 0x264   : > { %v1305_v27 = vpop.f32.mrb[20].mxu1 }
 0x265   : > { %v941_v28 = vadd.f32 %v1305_v27, %v1866_v51  ;;  %v932_v29 = vpop.f32.mrb[21].mxu1 }
 0x266   : > { %v933_v30 = vadd.f32 %v1866_v51, %v932_v29  ;;  %v1306_v31 = vpop.f32.mrb[22].mxu1 }
 0x267   : > { %1001 = vst [vmem:[%s1870_s28 + $0xb0] sm:$0xff] %v941_v28  ;;  %v944_v33 = vadd.f32 %v1306_v31, %v1866_v51  ;;  %v935_v34 = vpop.f32.mrb[23].mxu1 }
 0x268   : > { %999 = vst [vmem:[%s1870_s28 + $0xa0] sm:$0xff] %v933_v30  ;;  %v936_v35 = vadd.f32 %v1866_v51, %v935_v34 }
 0x269   : > { %1002 = vst [vmem:[%s1870_s28 + $0xb8] sm:$0xff] %v944_v33 }
 0x26a   : > { %1000 = vst [vmem:[%s1870_s28 + $0xa8] sm:$0xff] %v936_v35 }
 0x26c   : > { %v1309_v36 = vpop.f32.mrb[24].mxu1 }
 0x26d   : > { %v957_v37 = vadd.f32 %v1309_v36, %v1866_v51  ;;  %v948_v38 = vpop.f32.mrb[25].mxu1 }
 0x26e   : > { %v949_v39 = vadd.f32 %v1866_v51, %v948_v38  ;;  %v1310_v40 = vpop.f32.mrb[26].mxu1 }
 0x26f   : > { %1005 = vst [vmem:[%s1870_s28 + $0xd0] sm:$0xff] %v957_v37  ;;  %v960_v41 = vadd.f32 %v1310_v40, %v1866_v51  ;;  %v951_v42 = vpop.f32.mrb[27].mxu1 }
 0x270   : > { %1003 = vst [vmem:[%s1870_s28 + $0xc0] sm:$0xff] %v949_v39  ;;  %v952_v43 = vadd.f32 %v1866_v51, %v951_v42 }
 0x271   : > { %1006 = vst [vmem:[%s1870_s28 + $0xd8] sm:$0xff] %v960_v41 }
 0x272   : > { %1004 = vst [vmem:[%s1870_s28 + $0xc8] sm:$0xff] %v952_v43 }
 0x274   : > { %v1313_v44 = vpop.f32.mrb[28].mxu1 }
 0x275   : > { %v973_v45 = vadd.f32 %v1313_v44, %v1866_v51  ;;  %v964_v46 = vpop.f32.mrb[29].mxu1 }
 0x276   : > { %v965_v47 = vadd.f32 %v1866_v51, %v964_v46  ;;  %v1314_v48 = vpop.f32.mrb[30].mxu1 }
 0x277   : > { %1009 = vst [vmem:[%s1870_s28 + $0xf0] sm:$0xff] %v973_v45  ;;  %v976_v49 = vadd.f32 %v1314_v48, %v1866_v51  ;;  %v967_v50 = vpop.f32.mrb[31].mxu1 }
 0x278   : > { %1007 = vst [vmem:[%s1870_s28 + $0xe0] sm:$0xff] %v965_v47  ;;  %v968_v32 = vadd.f32 %v1866_v51, %v967_v50 }
 0x279   : > { %1010 = vst [vmem:[%s1870_s28 + $0xf8] sm:$0xff] %v976_v49 }
 0x27a   : > { %1008 = vst [vmem:[%s1870_s28 + $0xe8] sm:$0xff] %v968_v32 }
 0x27b   : > { %1517 = shalt.err (!%p1514_p1)
}
 0x27c   : > { %s1518_s24 = scalar_lea.hbm %s1935_s17, 4096  ;;  %s1522_s16 = scalar_lea.hbm %s1990_s5, 8192 }
 0x27d   : > { %p1519_p13 = scmp.ne.s32.totalorder %s1935_s17, %s1518_s24  ;;  %p1523_p4 = scmp.lt.u32.totalorder %s1935_s17, %s1990_s5 }
 0x27e   : > { %p1524_p5 = scmp.lt.u32.totalorder %s1522_s16, %s1518_s24  ;;  %p1526_p11 = scmp.lt.u32.totalorder %s1518_s24, %s1935_s17 }
 0x27f   : > { %p1520_p6 = pnand %p1519_p13, %p2004_p0 }
 0x280   : > { %p1525_p8 = por %p1524_p5, %p1523_p4 }
 0x281   : > { %p1521_p10 = pneg %p1520_p6 }
 0x282   : > { %p1527_p2 = por %p1526_p11, %p1525_p8 }
 0x284   : > { %p1528_p3 = pnand %p1527_p2, %p1521_p10 }
 0x286   : > { %1531 = shalt.err (!%p1528_p3)
}
 0x287   : > { %s1582_s12 = smov 128   ;;  %s1583_s30 = smov 8  }
 0x288   : > { %1325 = dma.vmem_to_hbm [thread:$0]  (%p2004_p0), %s1937_s13, 4096, %s1935_s17, %s1012_s22, %s1582_s12, %s1582_s12, %s1583_s30  }
 0x289 PF: > { %s1040_s11 = sand.u32 1, %s1562_s18   ;;  %p2005_p7 = scmp.ne.s32.totalorder %s1995_s25, 0 }
 0x28a   : > { %p2006_p9 = scmp.ge.s32.totalorder %s1574_s21, 2  ;;  %s1041_s7 = scalar_lea.sflag [#allocation4], %s1040_s11 }
 0x28c   : > { %p1339_p12 = pnand %p2006_p9, %p2005_p7 }
 0x28e   : > { %1557 = dma.done.wait (!%p1339_p12), %s1041_s7, 4096  }
 0x28f   : > { %1559 = vsyncadd (!%p1339_p12), %s1041_s7, 4294963200  ;;  %p19_p1 = scmp.ge.s32.totalorder %s1730_s29, 4   ;;  %s2007_s18 = smov %s1566_s19 }
 0x290   : > { %s2008_s19 = smov %s1570_s20  ;;  %s2009_s20 = smov %s1746_s27 }
 0x291   : > { %s2010_s21 = smov %s1730_s29  ;;  %21 = sbr.rel (!%p19_p1) target bundleno = 6 (0x6), region = 93 }
 0x298   :  { %1046 = vsyncpa [#allocation3], 1 }
 0x299   :  { %1048 = vsyncpa [#allocation3 + $0x1], 1 }
 0x29a   :  { %1049 = vsyncpa [#allocation6], 1 }
 0x29b   :  { %1050 = vsyncpa [#allocation4], 1 }
 0x29c   :  { %1052 = vsyncpa [#allocation4 + $0x1], 1 }

</bundles_post_ra>
